<compile_context>
chip_gen: v5e
topology: v5e:2x2
jax: 0.10.0
libtpu: 0.0.40
codegen_flags: <defaults>
</compile_context>

<pallas_src>
import functools

import jax
import jax.numpy as jnp
from jax.experimental import pallas as pl
from jax.experimental.pallas import tpu as pltpu


def _round_up(n, m):
    return ((n + m - 1) // m) * m


def lstm_seq_kernel(
    x_ref,       # (1, Bp, I)    f32   current timestep (streamed by BlockSpec)
    ew_ref,      # (I, H)        bf16  embed weight (pre-transposed), resident
    wcat_ref,    # (L, 2H, 4H)   bf16  [w_ih.T ; w_hh.T] per layer, resident
    ow_ref,      # (H, Op)       bf16  output weight (pre-transposed, lane-padded)
    bias_ref,    # (L+2, LP)     f32   packed biases: [eb | bcat_0..L-1 | ob]
    state0_ref,  # (Bp, SWp)     f32   incoming packed state [h0|c0|h1|c1|...]
    out_ref,     # (1, Bp, Op)   f32   per-step output
    state_ref,   # (Bp, SWp)     f32   packed state carried across grid steps
    *,
    num_layers,
    hidden_size,
):
    H = hidden_size
    L = num_layers
    Op = ow_ref.shape[1]
    bf16 = jnp.bfloat16
    f32 = jnp.float32

    # Load the incoming state once; afterwards the (VMEM-resident) output carries it.
    @pl.when(pl.program_id(0) == 0)
    def _():
        state_ref[...] = state0_ref[...]

    # embed = Linear(input_size, hidden_size): bf16 MXU matmul, f32 accumulate.
    x = x_ref[0]
    h_in = jnp.dot(x.astype(bf16), ew_ref[...],
                   preferred_element_type=f32) + bias_ref[0:1, :H]

    # Cascaded LSTM cells (static unroll over layers).
    for l in range(L):
        h_prev = state_ref[:, (2 * l) * H:(2 * l + 1) * H]
        c_prev = state_ref[:, (2 * l + 1) * H:(2 * l + 2) * H]

        # Two matmuls against static slices of the fused weight (no lane concat).
        gates = jnp.dot(h_in.astype(bf16), wcat_ref[l, :H, :],
                        preferred_element_type=f32)
        gates = gates + jnp.dot(h_prev.astype(bf16), wcat_ref[l, H:, :],
                                preferred_element_type=f32)
        gates = gates + bias_ref[1 + l:2 + l, :4 * H]

        # Two full-width EUP passes over the (Bp, 4H) block, then static slices.
        sig = jax.nn.sigmoid(gates)
        th = jnp.tanh(gates)
        i_g = sig[:, 0 * H:1 * H]
        f_g = sig[:, 1 * H:2 * H]
        g_g = th[:, 2 * H:3 * H]
        o_g = sig[:, 3 * H:4 * H]

        c_new = f_g * c_prev + i_g * g_g
        h_new = o_g * jnp.tanh(c_new)

        state_ref[:, (2 * l) * H:(2 * l + 1) * H] = h_new
        state_ref[:, (2 * l + 1) * H:(2 * l + 2) * H] = c_new
        h_in = h_new

    # output = Linear(hidden_size, output_size) + Tanh (lane-dense padded Op).
    out = jnp.tanh(jnp.dot(h_in.astype(bf16), ow_ref[...],
                           preferred_element_type=f32)
                   + bias_ref[L + 1:L + 2, :Op])
    out_ref[0] = out.astype(out_ref.dtype)


def init_params(key, *, input_size, hidden_size, output_size, num_layers):
    """Deterministic PyTorch-style uniform(-k, k) init (torch weight layout)."""
    ks = jax.random.split(key, 8)
    H, I, O, L = hidden_size, input_size, output_size, num_layers

    def u(k, shape, fan_in):
        bound = 1.0 / jnp.sqrt(jnp.float32(fan_in))
        return jax.random.uniform(k, shape, jnp.float32, -bound, bound)

    return {
        "embed_w": u(ks[0], (H, I), I),
        "embed_b": u(ks[1], (1, H), I),
        "w_ih": u(ks[2], (L, 4 * H, H), H),
        "w_hh": u(ks[3], (L, 4 * H, H), H),
        "b_ih": u(ks[4], (L, 1, 4 * H), H),
        "b_hh": u(ks[5], (L, 1, 4 * H), H),
        "out_w": u(ks[6], (O, H), H),
        "out_b": u(ks[7], (1, O), H),
    }


def prepare_params(raw):
    """One-time host-side weight prep: transpose to (in,out), fuse gate weights,
    pre-sum + pack all biases into one lane-padded array, lane-pad the output head,
    and cast matmul weights to bf16."""
    H, I = raw["embed_w"].shape
    L = raw["w_ih"].shape[0]
    O = raw["out_w"].shape[0]
    Op = _round_up(O, 128)
    SWp = _round_up(2 * L * H, 128)
    LP = _round_up(max(H, 4 * H, Op), 128)

    ew = raw["embed_w"].T.astype(jnp.bfloat16)                              # (I, H)
    wcat = jnp.concatenate(
        [jnp.transpose(raw["w_ih"], (0, 2, 1)),
         jnp.transpose(raw["w_hh"], (0, 2, 1))], axis=1
    ).astype(jnp.bfloat16)                                                  # (L, 2H, 4H)
    ow = (jnp.zeros((H, Op), jnp.float32)
          .at[:, :O].set(raw["out_w"].T)).astype(jnp.bfloat16)              # (H, Op)

    bias = jnp.zeros((L + 2, LP), jnp.float32)                              # packed biases
    bias = bias.at[0, :H].set(raw["embed_b"][0])
    bias = bias.at[1:1 + L, :4 * H].set((raw["b_ih"] + raw["b_hh"])[:, 0, :])
    bias = bias.at[L + 1, :O].set(raw["out_b"][0])

    return {"ew": ew, "wcat": wcat, "ow": ow, "bias": bias,
            "dims": (int(I), int(H), int(O), int(Op), int(L), int(SWp))}


def init_state(batch_size, prepared):
    """Zero packed state (batch padded to 16 sublanes, lanes padded to 128)."""
    _, _, _, _, _, SWp = prepared["dims"]
    Bp = _round_up(max(batch_size, 1), 16)
    return jnp.zeros((Bp, SWp), jnp.float32)


def unpack_state(state, batch_size, prepared):
    """Packed (Bp, L*2*H) state -> (h (L,B,H), c (L,B,H))."""
    _, H, _, _, L, _ = prepared["dims"]
    h = jnp.stack([state[:batch_size, (2 * l) * H:(2 * l + 1) * H] for l in range(L)])
    c = jnp.stack([state[:batch_size, (2 * l + 1) * H:(2 * l + 2) * H] for l in range(L)])
    return h, c


def lstm_block_forward_seq(x_seq, state, prepared):
    """Fused multi-fire: x_seq (T, B, I), packed state (Bp, SWp).
    Returns (out (T, B, O), new packed state). One pallas_call for all T steps."""
    I, H, O, Op, L, SWp = prepared["dims"]
    Bp = state.shape[0]
    T, B, _ = x_seq.shape
    LP = prepared["bias"].shape[1]

    x_p = jnp.zeros((T, Bp, I), jnp.float32).at[:, :B, :].set(x_seq)

    kernel = functools.partial(lstm_seq_kernel, num_layers=L, hidden_size=H)

    flops = 2 * T * Bp * (I * H + L * 2 * H * 4 * H + H * Op)
    transcendentals = T * Bp * (L * 9 * H + Op)
    bytes_accessed = int(
        x_p.size * 4 + prepared["ew"].size * 2 + prepared["wcat"].size * 2
        + prepared["ow"].size * 2 + prepared["bias"].size * 4
        + 2 * state.size * 4 + T * Bp * Op * 4)

    out_p, state_new = pl.pallas_call(
        kernel,
        grid=(T,),
        in_specs=[
            pl.BlockSpec((1, Bp, I), lambda t: (t, 0, 0)),        # x: streamed per step
            pl.BlockSpec((I, H), lambda t: (0, 0)),               # embed W: resident
            pl.BlockSpec((L, 2 * H, 4 * H), lambda t: (0, 0, 0)),  # gate W: resident
            pl.BlockSpec((H, Op), lambda t: (0, 0)),              # out W: resident
            pl.BlockSpec((L + 2, LP), lambda t: (0, 0)),          # packed biases: resident
            pl.BlockSpec((Bp, SWp), lambda t: (0, 0)),            # incoming state: resident
        ],
        out_specs=(
            pl.BlockSpec((1, Bp, Op), lambda t: (t, 0, 0)),       # per-step output
            pl.BlockSpec((Bp, SWp), lambda t: (0, 0)),            # final packed state
        ),
        out_shape=(
            jax.ShapeDtypeStruct((T, Bp, Op), jnp.float32),
            jax.ShapeDtypeStruct((Bp, SWp), jnp.float32),
        ),
        input_output_aliases={5: 1},                              # state updated in place
        compiler_params=pltpu.CompilerParams(
            dimension_semantics=("arbitrary",)),                  # recurrence across T
        cost_estimate=pl.CostEstimate(
            flops=flops, transcendentals=transcendentals,
            bytes_accessed=bytes_accessed),
    )(x_p, prepared["ew"], prepared["wcat"], prepared["ow"], prepared["bias"], state)

    return out_p[:, :B, :O], state_new


def lstm_block_forward(x, state, prepared):
    """One fire of the LSTM block (module forward semantics). x (B, I)."""
    out, state_new = lstm_block_forward_seq(x[None], state, prepared)
    return out[0], state_new


def reference_forward(x, raw, h_state, c_state, *, num_layers, hidden_size):
    """Pure-JAX reference mirroring the PyTorch forward (bf16 matmul inputs with
    f32 accumulation, matching the kernel's numerics). Returns (out, h, c)."""
    H = hidden_size
    bf16 = jnp.bfloat16

    def mm(a, w):  # a (B, in) x torch-style w (out, in) -> (B, out)
        return jnp.dot(a.astype(bf16), w.T.astype(bf16),
                       preferred_element_type=jnp.float32)

    h_in = mm(x, raw["embed_w"]) + raw["embed_b"]
    h_out, c_out = [], []
    for l in range(num_layers):
        gates = (mm(h_in, raw["w_ih"][l]) + mm(h_state[l], raw["w_hh"][l])
                 + raw["b_ih"][l] + raw["b_hh"][l])
        i_g = jax.nn.sigmoid(gates[:, 0 * H:1 * H])
        f_g = jax.nn.sigmoid(gates[:, 1 * H:2 * H])
        g_g = jnp.tanh(gates[:, 2 * H:3 * H])
        o_g = jax.nn.sigmoid(gates[:, 3 * H:4 * H])
        c = f_g * c_state[l] + i_g * g_g
        h = o_g * jnp.tanh(c)
        h_out.append(h)
        c_out.append(c)
        h_in = h
    out = jnp.tanh(mm(h_in, raw["out_w"]) + raw["out_b"])
    return out, jnp.stack(h_out), jnp.stack(c_out)


if __name__ == "__main__":
    INPUT_SIZE = 16
    HIDDEN_SIZE = 32
    OUTPUT_SIZE = 8
    NUM_LAYERS = 2
    BATCH = 2
    SEQ = 6

    key = jax.random.PRNGKey(0)
    k_x1, k_x2, k_seq, k_p = jax.random.split(key, 4)
    x1 = jax.random.normal(k_x1, (BATCH, INPUT_SIZE), jnp.float32)
    x2 = jax.random.normal(k_x2, (BATCH, INPUT_SIZE), jnp.float32)
    x_seq = jax.random.normal(k_seq, (SEQ, BATCH, INPUT_SIZE), jnp.float32)

    raw = init_params(k_p, input_size=INPUT_SIZE, hidden_size=HIDDEN_SIZE,
                      output_size=OUTPUT_SIZE, num_layers=NUM_LAYERS)
    prepared = prepare_params(raw)

    h0 = jnp.zeros((NUM_LAYERS, BATCH, HIDDEN_SIZE), jnp.float32)
    c0 = jnp.zeros((NUM_LAYERS, BATCH, HIDDEN_SIZE), jnp.float32)

    # Fire #1 (T=1): zero initial state (right after init_hidden).
    state = init_state(BATCH, prepared)
    out1, state = lstm_block_forward(x1, state, prepared)
    out1 = jax.block_until_ready(out1)
    ref1, rh1, rc1 = reference_forward(x1, raw, h0, c0,
                                       num_layers=NUM_LAYERS, hidden_size=HIDDEN_SIZE)
    h1, c1 = unpack_state(state, BATCH, prepared)
    assert out1.shape == (BATCH, OUTPUT_SIZE)
    assert jnp.allclose(out1, ref1, atol=1e-3, rtol=1e-3), "out mismatch (step 1)"
    assert jnp.allclose(h1, rh1, atol=1e-3, rtol=1e-3), "h mismatch (step 1)"
    assert jnp.allclose(c1, rc1, atol=1e-3, rtol=1e-3), "c mismatch (step 1)"

    # Fire #2: carried (nonzero) packed state kept resident across fires.
    out2, state = lstm_block_forward(x2, state, prepared)
    out2 = jax.block_until_ready(out2)
    ref2, rh2, rc2 = reference_forward(x2, raw, rh1, rc1,
                                       num_layers=NUM_LAYERS, hidden_size=HIDDEN_SIZE)
    h2, c2 = unpack_state(state, BATCH, prepared)
    assert out2.shape == (BATCH, OUTPUT_SIZE)
    assert jnp.allclose(out2, ref2, atol=1e-3, rtol=1e-3), "out mismatch (step 2)"
    assert jnp.allclose(h2, rh2, atol=1e-3, rtol=1e-3), "h mismatch (step 2)"
    assert jnp.allclose(c2, rc2, atol=1e-3, rtol=1e-3), "c mismatch (step 2)"

    # Fused-sequence fire: SEQ steps in a single pallas_call (launch/DMA amortized,
    # weights + state resident in VMEM across the grid).
    state_s = init_state(BATCH, prepared)
    outs, state_s = lstm_block_forward_seq(x_seq, state_s, prepared)
    outs = jax.block_until_ready(outs)
    h_r = jnp.zeros((NUM_LAYERS, BATCH, HIDDEN_SIZE), jnp.float32)
    c_r = jnp.zeros((NUM_LAYERS, BATCH, HIDDEN_SIZE), jnp.float32)
    ref_outs = []
    for t in range(SEQ):
        o_r, h_r, c_r = reference_forward(x_seq[t], raw, h_r, c_r,
                                          num_layers=NUM_LAYERS, hidden_size=HIDDEN_SIZE)
        ref_outs.append(o_r)
    ref_outs = jnp.stack(ref_outs)
    h_s, c_s = unpack_state(state_s, BATCH, prepared)
    assert outs.shape == (SEQ, BATCH, OUTPUT_SIZE)
    assert jnp.allclose(outs, ref_outs, atol=2e-3, rtol=2e-3), "seq out mismatch"
    assert jnp.allclose(h_s, h_r, atol=2e-3, rtol=2e-3), "seq h mismatch"
    assert jnp.allclose(c_s, c_r, atol=2e-3, rtol=2e-3), "seq c mismatch"

    # NOTE: the firing counter / period logic (check_counters) is host-side Python
    # control flow, not tensor compute; it is intentionally not a kernel.
    print("KERNEL_OK")
</pallas_src>

<mosaic_0001>
module attributes {stable_mosaic.version = 11 : i64} {
  func.func @lstm_seq_kernel(%arg0: i32, %arg1: memref<1x16x16xf32, #tpu.memory_space<vmem>>, %arg2: memref<16x32xbf16, #tpu.memory_space<vmem>>, %arg3: memref<2x64x128xbf16, #tpu.memory_space<vmem>>, %arg4: memref<32x128xbf16, #tpu.memory_space<vmem>>, %arg5: memref<4x128xf32, #tpu.memory_space<vmem>>, %arg6: memref<16x128xf32, #tpu.memory_space<vmem>>, %arg7: memref<1x16x128xf32, #tpu.memory_space<vmem>>, %arg8: memref<16x128xf32, #tpu.memory_space<vmem>>) attributes {dimension_semantics = [#tpu.dimension_semantics<arbitrary>], iteration_bounds = array<i64: 1>, scalar_prefetch = 0 : i64, scratch_operands = 0 : i64, tpu.core_type = #tpu.core_type<tc>, window_params = [{transform_indices = @transform_0, window_bounds = array<i64: 1, 16, 16>}, {pipeline_mode = #tpu.pipeline_mode<synchronous>, transform_indices = @transform_1, window_bounds = array<i64: 16, 32>}, {pipeline_mode = #tpu.pipeline_mode<synchronous>, transform_indices = @transform_2, window_bounds = array<i64: 2, 64, 128>}, {pipeline_mode = #tpu.pipeline_mode<synchronous>, transform_indices = @transform_3, window_bounds = array<i64: 32, 128>}, {pipeline_mode = #tpu.pipeline_mode<synchronous>, transform_indices = @transform_4, window_bounds = array<i64: 4, 128>}, {pipeline_mode = #tpu.pipeline_mode<synchronous>, transform_indices = @transform_5, window_bounds = array<i64: 16, 128>}, {transform_indices = @transform_6, window_bounds = array<i64: 1, 16, 128>}, {pipeline_mode = #tpu.pipeline_mode<synchronous>, transform_indices = @transform_7, window_bounds = array<i64: 16, 128>}]} {
    %c0_i32 = arith.constant 0 : i32
    %0 = arith.cmpi eq, %arg0, %c0_i32 : i32
    %1 = arith.extui %0 : i1 to i32
    %c0_i32_0 = arith.constant 0 : i32
    %2 = arith.cmpi ne, %1, %c0_i32_0 : i32
    scf.if %2 {
      %c0_47 = arith.constant 0 : index
      %c0_48 = arith.constant 0 : index
      %83 = vector.load %arg6[%c0_47, %c0_48] : memref<16x128xf32, #tpu.memory_space<vmem>>, vector<16x128xf32>
      %c0_49 = arith.constant 0 : index
      %c0_50 = arith.constant 0 : index
      %84 = vector.load %arg8[%c0_49, %c0_50] : memref<16x128xf32, #tpu.memory_space<vmem>>, vector<16x128xf32>
      tpu.vector_store %arg8[%c0_49, %c0_50], %83 {strides = array<i32>} : memref<16x128xf32, #tpu.memory_space<vmem>>, vector<16x128xf32>,
    } else {
    }
    %c0 = arith.constant 0 : index
    %c0_1 = arith.constant 0 : index
    %c0_2 = arith.constant 0 : index
    %3 = vector.load %arg1[%c0, %c0_1, %c0_2] : memref<1x16x16xf32, #tpu.memory_space<vmem>>, vector<1x16x16xf32>
    %4 = vector.shape_cast %3 : vector<1x16x16xf32> to vector<16x16xf32>
    %5 = arith.truncf %4 : vector<16x16xf32> to vector<16x16xbf16>
    %c0_3 = arith.constant 0 : index
    %c0_4 = arith.constant 0 : index
    %6 = vector.load %arg2[%c0_3, %c0_4] : memref<16x32xbf16, #tpu.memory_space<vmem>>, vector<16x32xbf16>
    %cst = arith.constant dense<0.000000e+00> : vector<16x32xf32>
    %7 = tpu.matmul %5, %6, %cst {dimension_numbers = #tpu.dot_dimension_numbers<[1], [0], [0], [1], [0, 0, 1, 1], [], []>} : vector<16x16xbf16>, vector<16x32xbf16>, vector<16x32xf32> -> vector<16x32xf32>
    %c0_5 = arith.constant 0 : index
    %c0_6 = arith.constant 0 : index
    %8 = vector.load %arg5[%c0_5, %c0_6] : memref<4x128xf32, #tpu.memory_space<vmem>>, vector<1x32xf32>
    %9 = vector.broadcast %8 : vector<1x32xf32> to vector<16x32xf32>
    %10 = arith.addf %7, %9 : vector<16x32xf32>
    %c0_7 = arith.constant 0 : index
    %c0_8 = arith.constant 0 : index
    %11 = vector.load %arg8[%c0_7, %c0_8] : memref<16x128xf32, #tpu.memory_space<vmem>>, vector<16x32xf32>
    %c0_9 = arith.constant 0 : index
    %c32 = arith.constant 32 : index
    %12 = vector.load %arg8[%c0_9, %c32] : memref<16x128xf32, #tpu.memory_space<vmem>>, vector<16x32xf32>
    %13 = arith.truncf %10 : vector<16x32xf32> to vector<16x32xbf16>
    %c0_10 = arith.constant 0 : index
    %c0_11 = arith.constant 0 : index
    %c0_12 = arith.constant 0 : index
    %14 = vector.load %arg3[%c0_10, %c0_11, %c0_12] : memref<2x64x128xbf16, #tpu.memory_space<vmem>>, vector<1x32x128xbf16>
    %15 = vector.shape_cast %14 : vector<1x32x128xbf16> to vector<32x128xbf16>
    %cst_13 = arith.constant dense<0.000000e+00> : vector<16x128xf32>
    %16 = tpu.matmul %13, %15, %cst_13 {dimension_numbers = #tpu.dot_dimension_numbers<[1], [0], [0], [1], [0, 0, 1, 1], [], []>} : vector<16x32xbf16>, vector<32x128xbf16>, vector<16x128xf32> -> vector<16x128xf32>
    %17 = arith.truncf %11 : vector<16x32xf32> to vector<16x32xbf16>
    %c0_14 = arith.constant 0 : index
    %c32_15 = arith.constant 32 : index
    %c0_16 = arith.constant 0 : index
    %18 = vector.load %arg3[%c0_14, %c32_15, %c0_16] : memref<2x64x128xbf16, #tpu.memory_space<vmem>>, vector<1x32x128xbf16>
    %19 = vector.shape_cast %18 : vector<1x32x128xbf16> to vector<32x128xbf16>
    %cst_17 = arith.constant dense<0.000000e+00> : vector<16x128xf32>
    %20 = tpu.matmul %17, %19, %cst_17 {dimension_numbers = #tpu.dot_dimension_numbers<[1], [0], [0], [1], [0, 0, 1, 1], [], []>} : vector<16x32xbf16>, vector<32x128xbf16>, vector<16x128xf32> -> vector<16x128xf32>
    %21 = arith.addf %16, %20 : vector<16x128xf32>
    %c1 = arith.constant 1 : index
    %c0_18 = arith.constant 0 : index
    %22 = vector.load %arg5[%c1, %c0_18] : memref<4x128xf32, #tpu.memory_space<vmem>>, vector<1x128xf32>
    %23 = vector.broadcast %22 : vector<1x128xf32> to vector<16x128xf32>
    %24 = arith.addf %21, %23 : vector<16x128xf32>
    %25 = arith.negf %24 : vector<16x128xf32>
    %26 = math.exp %25 : vector<16x128xf32>
    %cst_19 = arith.constant 1.000000e+00 : f32
    %27 = vector.broadcast %cst_19 : f32 to vector<16x128xf32>
    %28 = arith.addf %27, %26 : vector<16x128xf32>
    %29 = arith.divf %27, %28 : vector<16x128xf32>
    %30 = math.tanh %24 : vector<16x128xf32>
    %31 = vector.extract_strided_slice %29 {offsets = [0, 0], sizes = [16, 32], strides = [1, 1]} : vector<16x128xf32> to vector<16x32xf32>
    %32 = vector.extract_strided_slice %29 {offsets = [0, 32], sizes = [16, 32], strides = [1, 1]} : vector<16x128xf32> to vector<16x32xf32>
    %33 = vector.extract_strided_slice %30 {offsets = [0, 64], sizes = [16, 32], strides = [1, 1]} : vector<16x128xf32> to vector<16x32xf32>
    %34 = vector.extract_strided_slice %29 {offsets = [0, 96], sizes = [16, 32], strides = [1, 1]} : vector<16x128xf32> to vector<16x32xf32>
    %35 = arith.mulf %32, %12 : vector<16x32xf32>
    %36 = arith.mulf %31, %33 : vector<16x32xf32>
    %37 = arith.addf %35, %36 : vector<16x32xf32>
    %38 = math.tanh %37 : vector<16x32xf32>
    %39 = arith.mulf %34, %38 : vector<16x32xf32>
    %c0_20 = arith.constant 0 : index
    %c0_21 = arith.constant 0 : index
    %40 = vector.load %arg8[%c0_20, %c0_21] : memref<16x128xf32, #tpu.memory_space<vmem>>, vector<16x32xf32>
    tpu.vector_store %arg8[%c0_20, %c0_21], %39 {strides = array<i32>} : memref<16x128xf32, #tpu.memory_space<vmem>>, vector<16x32xf32>,
    %c0_22 = arith.constant 0 : index
    %c32_23 = arith.constant 32 : index
    %41 = vector.load %arg8[%c0_22, %c32_23] : memref<16x128xf32, #tpu.memory_space<vmem>>, vector<16x32xf32>
    tpu.vector_store %arg8[%c0_22, %c32_23], %37 {strides = array<i32>} : memref<16x128xf32, #tpu.memory_space<vmem>>, vector<16x32xf32>,
    %c0_24 = arith.constant 0 : index
    %c64 = arith.constant 64 : index
    %42 = vector.load %arg8[%c0_24, %c64] : memref<16x128xf32, #tpu.memory_space<vmem>>, vector<16x32xf32>
    %c0_25 = arith.constant 0 : index
    %c96 = arith.constant 96 : index
    %43 = vector.load %arg8[%c0_25, %c96] : memref<16x128xf32, #tpu.memory_space<vmem>>, vector<16x32xf32>
    %44 = arith.truncf %39 : vector<16x32xf32> to vector<16x32xbf16>
    %c1_26 = arith.constant 1 : index
    %c0_27 = arith.constant 0 : index
    %c0_28 = arith.constant 0 : index
    %45 = vector.load %arg3[%c1_26, %c0_27, %c0_28] : memref<2x64x128xbf16, #tpu.memory_space<vmem>>, vector<1x32x128xbf16>
    %46 = vector.shape_cast %45 : vector<1x32x128xbf16> to vector<32x128xbf16>
    %cst_29 = arith.constant dense<0.000000e+00> : vector<16x128xf32>
    %47 = tpu.matmul %44, %46, %cst_29 {dimension_numbers = #tpu.dot_dimension_numbers<[1], [0], [0], [1], [0, 0, 1, 1], [], []>} : vector<16x32xbf16>, vector<32x128xbf16>, vector<16x128xf32> -> vector<16x128xf32>
    %48 = arith.truncf %42 : vector<16x32xf32> to vector<16x32xbf16>
    %c1_30 = arith.constant 1 : index
    %c32_31 = arith.constant 32 : index
    %c0_32 = arith.constant 0 : index
    %49 = vector.load %arg3[%c1_30, %c32_31, %c0_32] : memref<2x64x128xbf16, #tpu.memory_space<vmem>>, vector<1x32x128xbf16>
    %50 = vector.shape_cast %49 : vector<1x32x128xbf16> to vector<32x128xbf16>
    %cst_33 = arith.constant dense<0.000000e+00> : vector<16x128xf32>
    %51 = tpu.matmul %48, %50, %cst_33 {dimension_numbers = #tpu.dot_dimension_numbers<[1], [0], [0], [1], [0, 0, 1, 1], [], []>} : vector<16x32xbf16>, vector<32x128xbf16>, vector<16x128xf32> -> vector<16x128xf32>
    %52 = arith.addf %47, %51 : vector<16x128xf32>
    %c2 = arith.constant 2 : index
    %c0_34 = arith.constant 0 : index
    %53 = vector.load %arg5[%c2, %c0_34] : memref<4x128xf32, #tpu.memory_space<vmem>>, vector<1x128xf32>
    %54 = vector.broadcast %53 : vector<1x128xf32> to vector<16x128xf32>
    %55 = arith.addf %52, %54 : vector<16x128xf32>
    %56 = arith.negf %55 : vector<16x128xf32>
    %57 = math.exp %56 : vector<16x128xf32>
    %cst_35 = arith.constant 1.000000e+00 : f32
    %58 = vector.broadcast %cst_35 : f32 to vector<16x128xf32>
    %59 = arith.addf %58, %57 : vector<16x128xf32>
    %60 = arith.divf %58, %59 : vector<16x128xf32>
    %61 = math.tanh %55 : vector<16x128xf32>
    %62 = vector.extract_strided_slice %60 {offsets = [0, 0], sizes = [16, 32], strides = [1, 1]} : vector<16x128xf32> to vector<16x32xf32>
    %63 = vector.extract_strided_slice %60 {offsets = [0, 32], sizes = [16, 32], strides = [1, 1]} : vector<16x128xf32> to vector<16x32xf32>
    %64 = vector.extract_strided_slice %61 {offsets = [0, 64], sizes = [16, 32], strides = [1, 1]} : vector<16x128xf32> to vector<16x32xf32>
    %65 = vector.extract_strided_slice %60 {offsets = [0, 96], sizes = [16, 32], strides = [1, 1]} : vector<16x128xf32> to vector<16x32xf32>
    %66 = arith.mulf %63, %43 : vector<16x32xf32>
    %67 = arith.mulf %62, %64 : vector<16x32xf32>
    %68 = arith.addf %66, %67 : vector<16x32xf32>
    %69 = math.tanh %68 : vector<16x32xf32>
    %70 = arith.mulf %65, %69 : vector<16x32xf32>
    %c0_36 = arith.constant 0 : index
    %c64_37 = arith.constant 64 : index
    %71 = vector.load %arg8[%c0_36, %c64_37] : memref<16x128xf32, #tpu.memory_space<vmem>>, vector<16x32xf32>
    tpu.vector_store %arg8[%c0_36, %c64_37], %70 {strides = array<i32>} : memref<16x128xf32, #tpu.memory_space<vmem>>, vector<16x32xf32>,
    %c0_38 = arith.constant 0 : index
    %c96_39 = arith.constant 96 : index
    %72 = vector.load %arg8[%c0_38, %c96_39] : memref<16x128xf32, #tpu.memory_space<vmem>>, vector<16x32xf32>
    tpu.vector_store %arg8[%c0_38, %c96_39], %68 {strides = array<i32>} : memref<16x128xf32, #tpu.memory_space<vmem>>, vector<16x32xf32>,
    %73 = arith.truncf %70 : vector<16x32xf32> to vector<16x32xbf16>
    %c0_40 = arith.constant 0 : index
    %c0_41 = arith.constant 0 : index
    %74 = vector.load %arg4[%c0_40, %c0_41] : memref<32x128xbf16, #tpu.memory_space<vmem>>, vector<32x128xbf16>
    %cst_42 = arith.constant dense<0.000000e+00> : vector<16x128xf32>
    %75 = tpu.matmul %73, %74, %cst_42 {dimension_numbers = #tpu.dot_dimension_numbers<[1], [0], [0], [1], [0, 0, 1, 1], [], []>} : vector<16x32xbf16>, vector<32x128xbf16>, vector<16x128xf32> -> vector<16x128xf32>
    %c3 = arith.constant 3 : index
    %c0_43 = arith.constant 0 : index
    %76 = vector.load %arg5[%c3, %c0_43] : memref<4x128xf32, #tpu.memory_space<vmem>>, vector<1x128xf32>
    %77 = vector.broadcast %76 : vector<1x128xf32> to vector<16x128xf32>
    %78 = arith.addf %75, %77 : vector<16x128xf32>
    %79 = math.tanh %78 : vector<16x128xf32>
    %c0_44 = arith.constant 0 : index
    %c0_45 = arith.constant 0 : index
    %c0_46 = arith.constant 0 : index
    %80 = vector.load %arg7[%c0_44, %c0_45, %c0_46] : memref<1x16x128xf32, #tpu.memory_space<vmem>>, vector<1x16x128xf32>
    %81 = vector.shape_cast %80 : vector<1x16x128xf32> to vector<16x128xf32>
    %82 = vector.shape_cast %79 : vector<16x128xf32> to vector<1x16x128xf32>
    tpu.vector_store %arg7[%c0_44, %c0_45, %c0_46], %82 {strides = array<i32>} : memref<1x16x128xf32, #tpu.memory_space<vmem>>, vector<1x16x128xf32>,
    return
  }
  func.func @transform_0(%arg0: i32) -> (i32, i32, i32) {
    %c0_i32 = arith.constant 0 : i32
    %c0_i32_0 = arith.constant 0 : i32
    %c0_i32_1 = arith.constant 0 : i32
    return %arg0, %c0_i32, %c0_i32_0 : i32, i32, i32
  }
  func.func @transform_1(%arg0: i32) -> (i32, i32) {
    %c0_i32 = arith.constant 0 : i32
    %c0_i32_0 = arith.constant 0 : i32
    %c0_i32_1 = arith.constant 0 : i32
    return %c0_i32, %c0_i32_0 : i32, i32
  }
  func.func @transform_2(%arg0: i32) -> (i32, i32, i32) {
    %c0_i32 = arith.constant 0 : i32
    %c0_i32_0 = arith.constant 0 : i32
    %c0_i32_1 = arith.constant 0 : i32
    %c0_i32_2 = arith.constant 0 : i32
    return %c0_i32, %c0_i32_0, %c0_i32_1 : i32, i32, i32
  }
  func.func @transform_3(%arg0: i32) -> (i32, i32) {
    %c0_i32 = arith.constant 0 : i32
    %c0_i32_0 = arith.constant 0 : i32
    %c0_i32_1 = arith.constant 0 : i32
    return %c0_i32, %c0_i32_0 : i32, i32
  }
  func.func @transform_4(%arg0: i32) -> (i32, i32) {
    %c0_i32 = arith.constant 0 : i32
    %c0_i32_0 = arith.constant 0 : i32
    %c0_i32_1 = arith.constant 0 : i32
    return %c0_i32, %c0_i32_0 : i32, i32
  }
  func.func @transform_5(%arg0: i32) -> (i32, i32) {
    %c0_i32 = arith.constant 0 : i32
    %c0_i32_0 = arith.constant 0 : i32
    %c0_i32_1 = arith.constant 0 : i32
    return %c0_i32, %c0_i32_0 : i32, i32
  }
  func.func @transform_6(%arg0: i32) -> (i32, i32, i32) {
    %c0_i32 = arith.constant 0 : i32
    %c0_i32_0 = arith.constant 0 : i32
    %c0_i32_1 = arith.constant 0 : i32
    return %arg0, %c0_i32, %c0_i32_0 : i32, i32, i32
  }
  func.func @transform_7(%arg0: i32) -> (i32, i32) {
    %c0_i32 = arith.constant 0 : i32
    %c0_i32_0 = arith.constant 0 : i32
    %c0_i32_1 = arith.constant 0 : i32
    return %c0_i32, %c0_i32_0 : i32, i32
  }
}

</mosaic_0001>

<bundles_post_ra>
// kernel: tpu_custom_call.1
= control target key start
LH: loop header
LB: loop body
LE: loop exit
PB: predicated region body
PF: predicated region fallthrough
CT: control target
= control target key end

     0   :  { %13 = vsyncpa [#allocation3], 0  ;;  %s961_s0 = inlined_call_operand.vmem [shape: f32[1,16,16], index: 0, kind: input, shape index: {}]   ;;  %s962_s1 = inlined_call_operand.hbm [shape: bf16[16,32], index: 1, kind: input, shape index: {}]   ;;  %s963_s2 = inlined_call_operand.hbm [shape: bf16[2,64,128], index: 2, kind: input, shape index: {}]   ;;  %s964_s3 = inlined_call_operand.vmem [shape: bf16[32,128], index: 3, kind: input, shape index: {}]   ;;  %s965_s4 = inlined_call_operand.hbm [shape: f32[4,128], index: 4, kind: input, shape index: {}]   ;;  %s966_s5 = inlined_call_operand.hbm [shape: f32[16,128], index: 5, kind: input, shape index: {}, may-alias: {5,7}]   ;;  %s967_s6 = inlined_call_operand.hbm [shape: f32[1,16,128], index: 6, kind: output, shape index: {0}]   ;;  %s968_s7 = inlined_call_operand.hbm [shape: f32[16,128], index: 7, kind: output, shape index: {1}, may-alias: {5,7}]  }
   0x1   :  { %14 = vsyncpa [#allocation6], 0 }
   0x2   :  { %15 = vsyncpa [#allocation9], 0 }
   0x3   :  { %16 = vsyncpa [#allocation4], 0 }
   0x4   :  { %17 = vsyncpa [#allocation12], 0  ;;  %s37_s26 = sshll.u32 %s963_s2, 4  ;;  %s828_s27 = smov [#allocation5]   ;;  %s38_s26 = int_to_ptr.hbm [resolvable:$true] %s37_s26 }
   0x5   :  { %s39_s28 = sshll.u32 %s828_s27, 4  ;;  %s24_s8 = sshll.u32 %s962_s1, 4  ;;  %s40_s28 = int_to_ptr.vmem [resolvable:$true] %s39_s28  ;;  %s25_s8 = int_to_ptr.hbm [resolvable:$true] %s24_s8 }
   0x6   :  { %s829_s9 = smov 64   ;;  %s830_s10 = smov 4  }
   0x7   :  { %45 = dma.hbm_to_vmem [thread:$0]  %s38_s26, 1024, %s40_s28, [#allocation6], %s829_s9, %s829_s9, %s830_s10  }
   0x8   :  { %s831_s11 = smov [#allocation2]   ;;  %s53_s2 = sshll.u32 %s965_s4, 4  ;;  %s54_s2 = int_to_ptr.hbm [resolvable:$true] %s53_s2 }
   0x9   :  { %s26_s12 = sshll.u32 %s831_s11, 4  ;;  %s63_s1 = sshll.u32 %s966_s5, 4  ;;  %s27_s12 = int_to_ptr.vmem [resolvable:$true] %s26_s12  ;;  %s64_s1 = int_to_ptr.hbm [resolvable:$true] %s63_s1 }
   0xa   :  { %32 = dma.hbm_to_vmem [thread:$0]  %s25_s8, 128, %s27_s12, [#allocation3], %s829_s9, %s829_s9, %s830_s10  }
   0xb   :  { %s832_s17 = smov [#allocation7]   ;;  %s833_s19 = smov [#allocation8]  }
   0xc   :  { %s55_s18 = sshll.u32 %s832_s17, 4  ;;  %s65_s20 = sshll.u32 %s833_s19, 4  ;;  %s56_s18 = int_to_ptr.vmem [resolvable:$true] %s55_s18  ;;  %s66_s20 = int_to_ptr.vmem [resolvable:$true] %s65_s20 }
   0xd   :  { %58 = dma.hbm_to_vmem [thread:$0]  %s54_s2, 64, %s56_s18, [#allocation6]  }
   0xe   :  { %s834_s21 = smov 128   ;;  %s835_s22 = smov 8  }
   0xf   :  { %71 = dma.hbm_to_vmem [thread:$0]  %s64_s1, 256, %s66_s20, [#allocation9], %s834_s21, %s834_s21, %s835_s22  }
  0x10   :  { %818 = dma.done.wait [#allocation3], 128  }
  0x11   :  { %819 = vsyncadd [#allocation3], 4294967168 }
  0x12   :  { %820 = dma.done.wait [#allocation6], 1088  }
  0x13   :  { %821 = vsyncadd [#allocation6], 4294966208 }
  0x14   :  { %822 = dma.done.wait [#allocation9], 256  }
  0x15   :  { %823 = vsyncadd [#allocation9], 4294967040  ;;  %v611_v0 = vld [vmem:[#allocation2] sm:$0xff]  ;;  %v98_v2 = vld [vmem:[%s961_s0 + $0x8] sm:$0xff]  ;;  %vm110_vm0 = vcmask 130048   ;;  %vm152_vm1 = vcmask 261120  }
  0x16   :  { %v97_v1 = vld [vmem:[%s961_s0] sm:$0xff]  ;;  %121 = vmatpush.bf16.msra.mxu0 %v611_v0  ;;  %v613_v5 = vld [vmem:[#allocation5 + $0x8] sm:$0xff]  ;;  %v614_v6 = vld [vmem:[#allocation5 + $0x10] sm:$0xff]  ;;  %s836_s0 = smov 32   ;;  %vm287_vm10 = vcmask 523520   ;;  %s837_s25 = smov 96  }
  0x17   :  { %v99_v3 = vpack.c.bf16 %v98_v2, %v97_v1  ;;  %v615_v4 = vld [vmem:[#allocation5 + $0x18] sm:$0xff]  ;;  %191 = vmatpush.bf16.msra.mxu2 %v613_v5  ;;  %v612_v7 = vld [vmem:[#allocation5] sm:$0xff]  ;;  %v907_v9 = vld [vmem:[#allocation8 + $0x8] sm:$0xff]  ;;  %s838_s30 = smov [#allocation11]   ;;  %s839_s11 = smov [#allocation10]  }
  0x18   :  { %162 = vmatpush.bf16.msra.mxu1 %v615_v4  ;;  %v905_v8 = vld [vmem:[#allocation8] sm:$0xff]  ;;  %96 = vst [vmem:[#allocation11 + $0x8] sm:$0xff] %v907_v9  ;;  %v634_v12 = vld [vmem:[#allocation7] ss:$0 sm:$0xff]  ;;  %v635_v18 = vld [vmem:[#allocation7 + $0x1] ss:$0 sm:$0xff] }
  0x19   :  { %561 = vmatmul.msk.bf16.vlgmr.msra.gmra.mxu0 %vm110_vm0, %v99_v3  ;;  %95 = vst [vmem:[#allocation11] sm:$0xff] %v905_v8  ;;  %v135_v10 = vpack.c.bf16 %v907_v9, %v905_v8  ;;  %s535_s8 = sshll.u32 %s838_s30, 4  ;;  %s522_s12 = sshll.u32 %s839_s11, 4  ;;  %s536_s8 = int_to_ptr.vmem [resolvable:$true] %s535_s8  ;;  %s523_s12 = int_to_ptr.vmem [resolvable:$true] %s522_s12 }
  0x1b   :  { %192 = vmatpush.bf16.msra.mxu2 %v612_v7  ;;  %v617_v7 = vld [vmem:[#allocation5 + $0x28] sm:$0xff] }
  0x1c   :  { %163 = vmatpush.bf16.msra.mxu1 %v614_v6  ;;  %359 = vmatpush.bf16.msrb.mxu0 %v617_v7 }
  0x1f   :  { %570 = vmatmul.msk.bf16.vlgmr.msra.gmra.mxu1 %vm152_vm1, %v135_v10  ;;  %v618_v10 = vld [vmem:[#allocation5 + $0x30] sm:$0xff] }
  0x96   :  { %v123_v11 = vpop.f32.mrf.mxu0 }
  0x97   :  { %v124_v14 = vadd.f32 %v634_v12, %v123_v11 }
  0x9c   :  { %v165_v17 = vpop.f32.mrf.mxu1 }
  0x9e   :  { %v125_v13 = vpop.f32.mrf.mxu0 }
  0x9f   :  { %v126_v15 = vadd.f32 %v634_v12, %v125_v13 }
  0xa1   :  { %v130_v16 = vpack.c.bf16 %v126_v15, %v124_v14 }
  0xa3   :  { %579 = vmatmul.msk.bf16.vlgmr.msra.gmra.mxu2 %vm152_vm1, %v130_v16 }
  0xa4   :  { %v167_v22 = vpop.f32.mrf.mxu1 }
 0x126   :  { %v194_v19 = vpop.f32.mrf.mxu2 }
 0x127   :  { %v195_v20 = vadd.f32 %v194_v19, %v165_v17  ;;  %v636_v19 = vld [vmem:[#allocation7 + $0x2] ss:$0 sm:$0xff] }
 0x129   :  { %v201_v21 = vadd.f32 %v635_v18, %v195_v20 }
 0x12b   :  { %638 = vtanh.f32 %v201_v21  ;;  %v580_v28 = vmul.f32 -1.442695, %v201_v21 }
 0x12e   :  { %v196_v23 = vpop.f32.mrf.mxu2 }
 0x12f   :  { %v197_v24 = vadd.f32 %v196_v23, %v167_v22 }
 0x131   :  { %v639_v25 = vpop.eup %638  ;;  %v202_v26 = vadd.f32 %v635_v18, %v197_v24 }
 0x132   :  { %247 = vrot.lane.b32.xlu0 %v639_v25, %s829_s9 }
 0x133   :  { %640 = vtanh.f32 %v202_v26  ;;  %v581_v29 = vmul.f32 -1.442695, %v202_v26 }
 0x134   :  { %642 = vpow2.f32 %v580_v28 }
 0x135   :  { %644 = vpow2.f32 %v581_v29 }
 0x139   :  { %v641_v27 = vpop.eup %640 }
 0x13a   :  { %249 = vrot.lane.b32.xlu0 %v641_v27, %s829_s9  ;;  %v643_v30 = vpop.eup %642 }
 0x13b   :  { %v209_v31 = vadd.f32 1.0, %v643_v30  ;;  %v645_v32 = vpop.eup %644 }
 0x13c   :  { %v210_v33 = vadd.f32 1.0, %v645_v32 }
 0x13d   :  { %646 = vrcp.f32 %v209_v31  ;;  %v222_v42 = vand.u32 2147483648, %v209_v31  ;;  %vm216_vm3 = vweird.f32 %v209_v31  ;;  %v220_v43 = vand.u32 2147483647, %v209_v31 }
 0x13e   :  { %648 = vrcp.f32 %v210_v33  ;;  %v237_v51 = vand.u32 2147483648, %v210_v33  ;;  %vm231_vm7 = vweird.f32 %v210_v33  ;;  %v235_v52 = vand.u32 2147483647, %v210_v33 }
 0x13f   :  { %v223_v46 = vor.u32 1.1754944e-38, %v222_v42  ;;  %vm221_vm5 = vcmp.eq.f32.partialorder %v220_v43, 8.507059e+37 }
 0x140   :  { %v238_v54 = vor.u32 1.1754944e-38, %v237_v51  ;;  %vm236_vm9 = vcmp.eq.f32.partialorder %v235_v52, 8.507059e+37 }
 0x143   :  { %v647_v34 = vpop.eup %646 }
 0x144   :  { %v212_v35 = vmul.f32 %v647_v34, %v209_v31  ;;  %v649_v37 = vpop.eup %648  ;;  %vm217_vm2 = vweird.f32 %v647_v34 }
 0x145   :  { %v227_v39 = vmul.f32 %v649_v37, %v210_v33  ;;  %vm218_vm4 = vmor %vm216_vm3, %vm217_vm2  ;;  %vm232_vm6 = vweird.f32 %v649_v37 }
 0x146   :  { %v213_v36 = vsub.f32 1.0, %v212_v35  ;;  %vm233_vm8 = vmor %vm231_vm7, %vm232_vm6 }
 0x147   :  { %v228_v41 = vsub.f32 1.0, %v227_v39 }
 0x148   :  { %v214_v38 = vmul.f32 %v647_v34, %v213_v36 }
 0x149   :  { %v229_v45 = vmul.f32 %v649_v37, %v228_v41 }
 0x14a   :  { %v215_v40 = vadd.f32 %v647_v34, %v214_v38 }
 0x14b   :  { %v230_v50 = vadd.f32 %v649_v37, %v229_v45 }
 0x14c   :  { %v219_v44 = vsel %vm218_vm4, %v647_v34, %v215_v40  ;;  %vm461_vm4 = vcmask 785920  }
 0x14d   :  { %v224_v48 = vsel %vm221_vm5, %v223_v46, %v219_v44  ;;  %v234_v53 = vsel %vm233_vm8, %v649_v37, %v230_v50  ;;  %vm472_vm5 = vcmask 1048320  }
 0x14e   :  { %v239_v56 = vsel %vm236_vm9, %v238_v54, %v234_v53  ;;  %v243_v58 = vmul.f32 %v224_v48, %v905_v8  ;;  %v616_v8 = vld [vmem:[#allocation5 + $0x20] sm:$0xff] }
 0x14f   :  { %v244_v61 = vmul.f32 %v239_v56, %v907_v9  ;;  %360 = vmatpush.bf16.msrb.mxu0 %v616_v8  ;;  %v619_v9 = vld [vmem:[#allocation5 + $0x38] sm:$0xff] }
 0x150   :  { %327 = vmatpush.bf16.msra.mxu3 %v619_v9 }
 0x154   :  { %328 = vmatpush.bf16.msra.mxu3 %v618_v10  ;;  %v621_v10 = vld [vmem:[%s964_s3 + $0x8] sm:$0xff] }
 0x155   :  { %506 = vmatpush.bf16.msrb.mxu1 %v621_v10 }
 0x1a4   :  { %v248_v47 = vpop.permute.xlu0 %247 }
 0x1a5   :  { %v253_v49 = vmul.f32 %v248_v47, %v224_v48 }
 0x1a7   :  { %257 = vrot.lane.b32.xlu1 %v253_v49, %s836_s0 }
 0x1ac   :  { %v250_v55 = vpop.permute.xlu0 %249 }
 0x1ad   :  { %v254_v57 = vmul.f32 %v250_v55, %v239_v56 }
 0x1af   :  { %259 = vrot.lane.b32.xlu1 %v254_v57, %s836_s0 }
 0x219   :  { %v258_v59 = vpop.permute.xlu1 %257 }
 0x21a   :  { %v263_v60 = vadd.f32 %v258_v59, %v243_v58 }
 0x21c   :  { %650 = vtanh.f32 %v263_v60 }
 0x221   :  { %v260_v62 = vpop.permute.xlu1 %259 }
 0x222   :  { %v651_v63 = vpop.eup %650  ;;  %v264_v0 = vadd.f32 %v260_v62, %v244_v61 }
 0x223   :  { %269 = vrot.lane.b32.xlu2 %v651_v63, %s829_s9 }
 0x224   :  { %652 = vtanh.f32 %v264_v0 }
 0x22a   :  { %v653_v1 = vpop.eup %652 }
 0x22b   :  { %271 = vrot.lane.b32.xlu2 %v653_v1, %s829_s9 }
 0x27d   :  { %v270_v2 = vpop.permute.xlu2 %269 }
 0x27e   :  { %v275_v3 = vmul.f32 %v270_v2, %v224_v48 }
 0x280   :  { %279 = vrot.lane.b32.xlu0 %v275_v3, %s836_s0 }
 0x285   :  { %v272_v4 = vpop.permute.xlu2 %271 }
 0x286   :  { %v276_v5 = vmul.f32 %v272_v4, %v239_v56 }
 0x288   :  { %v292_v6 = vpack.c.bf16 %v276_v5, %v275_v3  ;;  %281 = vrot.lane.b32.xlu1 %v276_v5, %s836_s0 }
 0x28a   :  { %336 = vrot.lane.b32.xlu0 %v292_v6, %s836_s0 }
 0x2f2   :  { %v280_v11 = vpop.permute.xlu0 %279 }
 0x2f3   :  { %285 = vst.msk [vmem:[#allocation11] sm:$0xff] %vm152_vm1, %v280_v11  ;;  %v620_v11 = vld [vmem:[%s964_s3] sm:$0xff]  ;;  %s537_s3 = sshll.u32 %s968_s7, 4  ;;  %s524_s7 = sshll.u32 %s967_s6, 4  ;;  %s538_s3 = int_to_ptr.hbm [resolvable:$true] %s537_s3  ;;  %s525_s7 = int_to_ptr.hbm [resolvable:$true] %s524_s7 }
 0x2f4   :  { %288 = vst.msk [vmem:[#allocation11] sm:$0xff] %vm287_vm10, %v263_v60  ;;  %507 = vmatpush.bf16.msrb.mxu1 %v620_v11 }
 0x2fa   :  { %v282_v12 = vpop.permute.xlu1 %281 }
 0x2fb   :  { %286 = vst.msk [vmem:[#allocation11 + $0x8] sm:$0xff] %vm152_vm1, %v282_v12  ;;  %v290_v13 = vld [vmem:[#allocation11] sm:$0xff] }
 0x2fc   :  { %289 = vst.msk [vmem:[#allocation11 + $0x8] sm:$0xff] %vm287_vm10, %v264_v0  ;;  %413 = vrot.lane.b32.xlu0 %v290_v13, %s829_s9  ;;  %v337_v14 = vpop.permute.xlu0 %336 }
 0x2fd   :  { %599 = vmatmul.msk.bf16.vlgmr.msrb.gmra.mxu0 %vm152_vm1, %v337_v14 }
 0x303   :  { %v291_v15 = vld [vmem:[#allocation11 + $0x8] sm:$0xff] }
 0x304   :  { %v298_v16 = vpack.c.bf16 %v291_v15, %v290_v13 }
 0x306   :  { %304 = vrot.lane.b32.xlu2 %v298_v16, %s829_s9 }
 0x360   :  { %v305_v17 = vpop.permute.xlu2 %304 }
 0x361   :  { %590 = vmatmul.msk.bf16.vlgmr.msra.gmra.mxu3 %vm152_vm1, %v305_v17  ;;  %v637_v17 = vld [vmem:[#allocation7 + $0x3] ss:$0 sm:$0xff] }
 0x36e   :  { %v414_v59 = vpop.permute.xlu0 %413 }
 0x37a   :  { %v362_v18 = vpop.f32.mrf.mxu0 }
 0x382   :  { %v364_v23 = vpop.f32.mrf.mxu0 }
 0x3e4   :  { %v330_v20 = vpop.f32.mrf.mxu3 }
 0x3e5   :  { %v363_v21 = vadd.f32 %v362_v18, %v330_v20 }
 0x3e7   :  { %v369_v22 = vadd.f32 %v636_v19, %v363_v21 }
 0x3e9   :  { %654 = vtanh.f32 %v369_v22  ;;  %v600_v32 = vmul.f32 -1.442695, %v369_v22 }
 0x3ec   :  { %v332_v24 = vpop.f32.mrf.mxu3 }
 0x3ed   :  { %v365_v25 = vadd.f32 %v364_v23, %v332_v24 }
 0x3ef   :  { %v655_v26 = vpop.eup %654  ;;  %v370_v27 = vadd.f32 %v636_v19, %v365_v25 }
 0x3f0   :  { %423 = vrot.lane.b32.xlu1 %v655_v26, %s829_s9 }
 0x3f1   :  { %656 = vtanh.f32 %v370_v27  ;;  %v601_v29 = vmul.f32 -1.442695, %v370_v27 }
 0x3f3   :  { %658 = vpow2.f32 %v601_v29 }
 0x3f7   :  { %v657_v28 = vpop.eup %656 }
 0x3f8   :  { %425 = vrot.lane.b32.xlu2 %v657_v28, %s829_s9  ;;  %415 = vrot.lane.b32.xlu1 %v291_v15, %s829_s9 }
 0x3f9   :  { %v659_v30 = vpop.eup %658 }
 0x3fa   :  { %v378_v31 = vadd.f32 1.0, %v659_v30 }
 0x3fc   :  { %660 = vrcp.f32 %v378_v31  ;;  %v405_v41 = vand.u32 2147483648, %v378_v31  ;;  %vm399_vm12 = vweird.f32 %v378_v31  ;;  %v403_v42 = vand.u32 2147483647, %v378_v31 }
 0x3fd   :  { %662 = vpow2.f32 %v600_v32 }
 0x3fe   :  { %v406_v45 = vor.u32 1.1754944e-38, %v405_v41  ;;  %vm404_vm14 = vcmp.eq.f32.partialorder %v403_v42, 8.507059e+37 }
 0x402   :  { %v661_v33 = vpop.eup %660 }
 0x403   :  { %v663_v34 = vpop.eup %662  ;;  %v395_v35 = vmul.f32 %v661_v33, %v378_v31  ;;  %vm400_vm11 = vweird.f32 %v661_v33 }
 0x404   :  { %v377_v36 = vadd.f32 1.0, %v663_v34  ;;  %vm401_vm13 = vmor %vm399_vm12, %vm400_vm11 }
 0x405   :  { %v396_v37 = vsub.f32 1.0, %v395_v35 }
 0x406   :  { %664 = vrcp.f32 %v377_v36  ;;  %v390_v52 = vand.u32 2147483648, %v377_v36  ;;  %vm384_vm0 = vweird.f32 %v377_v36  ;;  %v388_v53 = vand.u32 2147483647, %v377_v36 }
 0x407   :  { %v397_v38 = vmul.f32 %v661_v33, %v396_v37 }
 0x408   :  { %v391_v55 = vor.u32 1.1754944e-38, %v390_v52  ;;  %vm389_vm3 = vcmp.eq.f32.partialorder %v388_v53, 8.507059e+37 }
 0x409   :  { %v398_v39 = vadd.f32 %v661_v33, %v397_v38 }
 0x40b   :  { %v402_v43 = vsel %vm401_vm13, %v661_v33, %v398_v39 }
 0x40c   :  { %v665_v40 = vpop.eup %664  ;;  %v407_v47 = vsel %vm404_vm14, %v406_v45, %v402_v43 }
 0x40d   :  { %v380_v44 = vmul.f32 %v665_v40, %v377_v36  ;;  %vm385_vm15 = vweird.f32 %v665_v40 }
 0x40e   :  { %vm386_vm2 = vmor %vm384_vm0, %vm385_vm15 }
 0x40f   :  { %v381_v49 = vsub.f32 1.0, %v380_v44 }
 0x411   :  { %v382_v50 = vmul.f32 %v665_v40, %v381_v49 }
 0x413   :  { %v383_v51 = vadd.f32 %v665_v40, %v382_v50 }
 0x415   :  { %v387_v54 = vsel %vm386_vm2, %v665_v40, %v383_v51 }
 0x416   :  { %v392_v57 = vsel %vm389_vm3, %v391_v55, %v387_v54 }
 0x417   :  { %v419_v60 = vmul.f32 %v414_v59, %v392_v57 }
 0x452   :  { %v426_v46 = vpop.permute.xlu2 %425 }
 0x453   :  { %v430_v48 = vmul.f32 %v426_v46, %v407_v47 }
 0x455   :  { %435 = vrot.lane.b32.xlu0 %v430_v48, %s836_s0 }
 0x462   :  { %v424_v56 = vpop.permute.xlu1 %423 }
 0x463   :  { %v429_v58 = vmul.f32 %v424_v56, %v392_v57 }
 0x465   :  { %433 = vrot.lane.b32.xlu2 %v429_v58, %s836_s0 }
 0x46a   :  { %v416_v63 = vpop.permute.xlu1 %415 }
 0x46b   :  { %v420_v0 = vmul.f32 %v416_v63, %v407_v47 }
 0x4bf   :  { %v434_v61 = vpop.permute.xlu2 %433 }
 0x4c0   :  { %v439_v62 = vadd.f32 %v434_v61, %v419_v60 }
 0x4c2   :  { %666 = vtanh.f32 %v439_v62 }
 0x4c7   :  { %v436_v1 = vpop.permute.xlu0 %435 }
 0x4c8   :  { %v667_v2 = vpop.eup %666  ;;  %v440_v3 = vadd.f32 %v436_v1, %v420_v0 }
 0x4c9   :  { %445 = vrot.lane.b32.xlu1 %v667_v2, %s829_s9 }
 0x4ca   :  { %668 = vtanh.f32 %v440_v3 }
 0x4d0   :  { %v669_v4 = vpop.eup %668 }
 0x4d1   :  { %447 = vrot.lane.b32.xlu2 %v669_v4, %s829_s9 }
 0x52b   :  { %v448_v5 = vpop.permute.xlu2 %447 }
 0x52c   :  { %v452_v6 = vmul.f32 %v448_v5, %v407_v47 }
 0x52e   :  { %457 = vrot.lane.b32.xlu2 %v452_v6, %s837_s25 }
 0x53b   :  { %v446_v7 = vpop.permute.xlu1 %445 }
 0x53c   :  { %v451_v8 = vmul.f32 %v446_v7, %v392_v57 }
 0x53e   :  { %v475_v9 = vpack.c.bf16 %v452_v6, %v451_v8  ;;  %455 = vrot.lane.b32.xlu1 %v451_v8, %s837_s25 }
 0x540   :  { %483 = vrot.lane.b32.xlu0 %v475_v9, %s836_s0 }
 0x546   :  { %468 = vrot.lane.b32.xlu1 %v440_v3, %s829_s9 }
 0x548   :  { %466 = vrot.lane.b32.xlu0 %v439_v62, %s829_s9 }
 0x588   :  { %v458_v12 = vpop.permute.xlu2 %457 }
 0x589   :  { %463 = vst.msk [vmem:[#allocation11 + $0x8] sm:$0xff] %vm461_vm4, %v458_v12 }
 0x5b0   :  { %v456_v13 = vpop.permute.xlu1 %455 }
 0x5b1   :  { %462 = vst.msk [vmem:[#allocation11] sm:$0xff] %vm461_vm4, %v456_v13 }
 0x5b2   :  { %v484_v14 = vpop.permute.xlu0 %483 }
 0x5b3   :  { %610 = vmatmul.msk.bf16.vlgmr.msrb.gmra.mxu1 %vm152_vm1, %v484_v14 }
 0x5b8   :  { %v469_v15 = vpop.permute.xlu1 %468 }
 0x5b9   :  { %474 = vst.msk [vmem:[#allocation11 + $0x8] sm:$0xff] %vm472_vm5, %v469_v15 }
 0x5ba   :  { %v467_v16 = vpop.permute.xlu0 %466 }
 0x5bb   :  { %473 = vst.msk [vmem:[#allocation11] sm:$0xff] %vm472_vm5, %v467_v16 }
 0x5bc   :  { %543 = dma.vmem_to_hbm [thread:$0]  %s536_s8, 256, %s538_s3, [#allocation12], %s834_s21, %s834_s21, %s835_s22  }
 0x630   :  { %v509_v18 = vpop.f32.mrf.mxu1 }
 0x631   :  { %v510_v19 = vadd.f32 %v637_v17, %v509_v18 }
 0x633   :  { %670 = vtanh.f32 %v510_v19 }
 0x638   :  { %v511_v20 = vpop.f32.mrf.mxu1 }
 0x639   :  { %v671_v21 = vpop.eup %670  ;;  %v512_v22 = vadd.f32 %v637_v17, %v511_v20 }
 0x63a   :  { %516 = vst [vmem:[#allocation10] sm:$0xff] %v671_v21 }
 0x63b   :  { %672 = vtanh.f32 %v512_v22 }
 0x641   :  { %v673_v23 = vpop.eup %672 }
 0x642   :  { %517 = vst [vmem:[#allocation10 + $0x8] sm:$0xff] %v673_v23 }
 0x643   :  { %530 = dma.vmem_to_hbm [thread:$0]  %s523_s12, 256, %s525_s7, [#allocation4], %s834_s21, %s834_s21, %s835_s22  }
 0x644   :  { %824 = dma.done.wait [#allocation4], 256  }
 0x645   :  { %825 = vsyncadd [#allocation4], 4294967040 }
 0x646   :  { %826 = dma.done.wait [#allocation12], 256  }
 0x647   :  { %827 = vsyncadd [#allocation12], 4294967040 }
 0x648   :  { %552 = vsyncpa [#allocation3], 1 }
 0x649   :  { %553 = vsyncpa [#allocation6], 1 }
 0x64a   :  { %554 = vsyncpa [#allocation9], 1 }
 0x64b   :  { %555 = vsyncpa [#allocation4], 1 }
 0x64c   :  { %556 = vsyncpa [#allocation12], 1 }

</bundles_post_ra>
